<compile_context>
chip_gen: v7x
topology: tpu7x:2x2x1
jax: 0.10.0
libtpu: 0.0.40
codegen_flags: <defaults>
</compile_context>

<pallas_src>
import functools

import jax
import jax.numpy as jnp
from jax.experimental import pallas as pl
from jax.experimental.pallas import tpu as pltpu

EPS = 1e-5


# ---------------------------------------------------------------------------
# Tiling helpers (no padding on the hot path; full-dim blocks for small dims)
# ---------------------------------------------------------------------------
def _round_up(x, m):
    return (x + m - 1) // m * m


def _tile_m(m):
    if m % 256 == 0:
        return 256, m
    if m % 128 == 0:
        return 128, m
    if m <= 256:
        mp = _round_up(m, 16)          # bf16 sublane packing friendly
        return mp, mp
    mp = _round_up(m, 128)
    return 128, mp


def _tile_n(n):
    if n % 256 == 0:
        return 256, n
    if n % 128 == 0:
        return 128, n
    if n <= 256:
        return n, n                    # full (possibly narrow) lane dim
    np_ = _round_up(n, 128)
    return 128, np_


def _tile_k(k):
    for t in (1024, 512, 256, 128):
        if k % t == 0:
            return t, k
    kp = _round_up(k, 128)             # only tiny K (e.g. 16*3=48) hits this
    return 128, kp


# ---------------------------------------------------------------------------
# Pallas kernel: fused (pre-activation -> matmul -> affine -> optional tanh)
# ---------------------------------------------------------------------------
def _matmul_kernel(x_ref, w_ref, s_ref, b_ref, o_ref, acc_ref, *, in_act, out_act):
    """o = out_act((in_act(x) @ w) * s + b); K is the innermost grid axis."""

    @pl.when(pl.program_id(2) == 0)
    def _():
        acc_ref[...] = jnp.zeros_like(acc_ref)

    x = x_ref[...]
    if in_act is not None:                       # fused LeakyReLU / ReLU prologue
        xf = x.astype(jnp.float32)
        if in_act == 0.0:
            xf = jnp.maximum(xf, 0.0)
        else:
            xf = jnp.where(xf >= 0.0, xf, xf * in_act)
        x = xf.astype(x_ref.dtype)
    acc_ref[...] += jnp.dot(x, w_ref[...], preferred_element_type=jnp.float32)

    @pl.when(pl.program_id(2) == pl.num_programs(2) - 1)
    def _():
        y = acc_ref[...] * s_ref[...] + b_ref[...]
        if out_act == "tanh":
            y = jnp.tanh(y)
        o_ref[...] = y.astype(o_ref.dtype)


def matmul_affine_act(x, w, scale, bias, *, in_act=None, out_act="none",
                      out_dtype=jnp.float32):
    """y[m,n] = out_act((sum_k in_act(x[m,k]) * w[k,n]) * scale[n] + bias[n]).

    Operands are cast to bf16; accumulation + epilogue stay in f32.
    """
    M, K = x.shape
    Kw, N = w.shape
    assert K == Kw and scale.shape == (N,) and bias.shape == (N,)
    x = x.astype(jnp.bfloat16)
    w = w.astype(jnp.bfloat16)

    tm, Mp = _tile_m(M)
    tn, Np = _tile_n(N)
    tk, Kp = _tile_k(K)

    if Mp != M or Kp != K:
        x = jnp.pad(x, ((0, Mp - M), (0, Kp - K)))
    if Kp != K or Np != N:
        w = jnp.pad(w, ((0, Kp - K), (0, Np - N)))
    s = scale.reshape(1, N).astype(jnp.float32)
    b = bias.reshape(1, N).astype(jnp.float32)
    if Np != N:
        s = jnp.pad(s, ((0, 0), (0, Np - N)))
        b = jnp.pad(b, ((0, 0), (0, Np - N)))

    out = pl.pallas_call(
        functools.partial(_matmul_kernel, in_act=in_act, out_act=out_act),
        out_shape=jax.ShapeDtypeStruct((Mp, Np), out_dtype),
        grid_spec=pltpu.PrefetchScalarGridSpec(
            num_scalar_prefetch=0,
            grid=(Mp // tm, Np // tn, Kp // tk),
            in_specs=[
                pl.BlockSpec((tm, tk), lambda i, j, k: (i, k)),
                pl.BlockSpec((tk, tn), lambda i, j, k: (k, j)),
                pl.BlockSpec((1, tn), lambda i, j, k: (0, j)),
                pl.BlockSpec((1, tn), lambda i, j, k: (0, j)),
            ],
            out_specs=pl.BlockSpec((tm, tn), lambda i, j, k: (i, j)),
            scratch_shapes=[pltpu.VMEM((tm, tn), jnp.float32)],
        ),
        compiler_params=pltpu.CompilerParams(
            dimension_semantics=("parallel", "parallel", "arbitrary")),
    )(x, w, s, b)
    if Mp != M or Np != N:
        out = out[:M, :N]
    return out


# ---------------------------------------------------------------------------
# Weight packing (done once at init; BN / conv-bias already folded separately)
# ---------------------------------------------------------------------------
def pack_conv_weight(w):
    """PyTorch Conv2d weight (Cout, Cin, 4, 4) -> (16*Cin, Cout) bf16 matrix."""
    cout = w.shape[0]
    return jnp.transpose(w, (2, 3, 1, 0)).reshape(-1, cout).astype(jnp.bfloat16)


def pack_convT_weight(w):
    """PyTorch ConvTranspose2d weight (Cin, Cout, 4, 4) -> two (6*Cin, 2*Cout)
    bf16 matrices, one per output-row parity (columns ordered px-major)."""
    cin, cout = w.shape[0], w.shape[1]
    wms = []
    for py in (0, 1):
        rows = []
        for dy in range(2):
            for dxp in range(3):
                cols = []
                for px in range(2):
                    dx = dxp - px
                    if 0 <= dx <= 1:
                        cols.append(w[:, :, 3 - py - 2 * dy, 3 - px - 2 * dx])
                    else:
                        cols.append(jnp.zeros((cin, cout), w.dtype))
                rows.append(jnp.concatenate(cols, axis=1))        # (cin, 2*cout)
        wms.append(jnp.concatenate(rows, axis=0).astype(jnp.bfloat16))
    return wms


# ---------------------------------------------------------------------------
# Conv / ConvTranspose wrappers (im2col glue in JAX, matmul + epilogue in Pallas)
# ---------------------------------------------------------------------------
def conv4x4_s2(x, wm, scale, bias, *, in_act=None, out_dtype=jnp.bfloat16):
    """Conv2d(k=4, s=2, p=1, bias=False) + folded per-channel affine.  NHWC.
    `in_act` is the LeakyReLU slope fused as a prologue (None = no activation)."""
    n, h, wi, cin = x.shape
    cout = wm.shape[1]
    ho, wo = h // 2, wi // 2
    xp = jnp.pad(x, ((0, 0), (1, 1), (1, 1), (0, 0)))
    pieces = [xp[:, ky:ky + 2 * ho:2, kx:kx + 2 * wo:2, :]
              for ky in range(4) for kx in range(4)]
    patch = jnp.concatenate(pieces, axis=-1).reshape(n * ho * wo, 16 * cin)
    y = matmul_affine_act(patch, wm, scale, bias,
                          in_act=in_act, out_act="none", out_dtype=out_dtype)
    return y.reshape(n, ho, wo, cout)


def convT4x4_s2(xs, wms, scale, bias, *, in_act=None, out_act="none",
                out_dtype=jnp.bfloat16):
    """ConvTranspose2d(k=4, s=2, p=1) + folded affine (+ optional tanh).  NHWC.

    xs  : list of NHWC tensors, conceptually channel-concatenated (the skip
          connection is never materialized as a single tensor).
    wms : two pre-packed (6*Cin, 2*Cout) matrices from pack_convT_weight.
    """
    n, h, wi = xs[0].shape[:3]
    cout = wms[0].shape[1] // 2
    m = n * h * wi
    xps = [jnp.pad(x, ((0, 0), (1, 1), (1, 1), (0, 0))) for x in xs]
    scale2 = jnp.concatenate([scale, scale]).astype(jnp.float32)
    bias2 = jnp.concatenate([bias, bias]).astype(jnp.float32)

    halves = []
    for py in (0, 1):
        pieces = [xp[:, py + dy:py + dy + h, dxp:dxp + wi, :]
                  for dy in range(2) for dxp in range(3) for xp in xps]
        patch = jnp.concatenate(pieces, axis=-1).reshape(m, -1)
        y = matmul_affine_act(patch, wms[py], scale2, bias2,
                              in_act=in_act, out_act=out_act,
                              out_dtype=out_dtype)
        halves.append(y.reshape(n, h, wi, 2, cout))     # [n, i, j, px, c]
    out = jnp.stack(halves, axis=2)                     # (n, h, 2, w, 2, c)
    return out.reshape(n, 2 * h, 2 * wi, cout)          # row-major interleave


# ---------------------------------------------------------------------------
# Parameters (deterministic, synthetic, pre-packed) and forward pass
# ---------------------------------------------------------------------------
def init_params(key):
    enc_channels = [3, 64, 128, 256, 512, 512, 512, 512, 512]   # encoder_ver2
    dec_cfg = [(512, 512), (1024, 512), (1024, 512), (1024, 512),
               (1024, 256), (512, 128), (256, 64), (128, 3)]     # decoder_3v1
    keys = iter(jax.random.split(key, 128))

    def bn_affine(cout):
        gamma = 1.0 + 0.1 * jax.random.normal(next(keys), (cout,), jnp.float32)
        beta = 0.1 * jax.random.normal(next(keys), (cout,), jnp.float32)
        rmean = 0.1 * jax.random.normal(next(keys), (cout,), jnp.float32)
        rvar = jax.random.uniform(next(keys), (cout,), jnp.float32, 0.5, 1.5)
        scale = gamma / jnp.sqrt(rvar + EPS)
        bias = beta - rmean * scale
        return scale, bias

    enc = []
    n_enc = len(enc_channels) - 1
    for li in range(n_enc):
        cin, cout = enc_channels[li], enc_channels[li + 1]
        w = jax.random.normal(next(keys), (cout, cin, 4, 4),
                              jnp.float32) / jnp.sqrt(cin * 16.0)
        if 0 < li < n_enc - 1:         # middle layers: conv + BN
            scale, bias = bn_affine(cout)
        else:                          # first (conv only) / last (no BN)
            scale = jnp.ones((cout,), jnp.float32)
            bias = jnp.zeros((cout,), jnp.float32)
        enc.append(dict(wm=pack_conv_weight(w), scale=scale, bias=bias))

    dec = []
    n_dec = len(dec_cfg)
    for li, (cin, cout) in enumerate(dec_cfg):
        w = jax.random.normal(next(keys), (cin, cout, 4, 4),
                              jnp.float32) / jnp.sqrt(cin * 4.0)
        if li == n_dec - 1:            # ConvTranspose with bias + Tanh
            cb = 0.01 * jax.random.normal(next(keys), (cout,), jnp.float32)
            scale = jnp.ones((cout,), jnp.float32)
            bias = cb                  # folded conv bias (scale=1, BN bias=0)
        else:                          # ConvTranspose (no bias) + BN (+ dropout=id)
            scale, bias = bn_affine(cout)
        dec.append(dict(wms=pack_convT_weight(w), scale=scale, bias=bias))
    return dict(enc=enc, dec=dec)


def generator_forward(params, x_nchw):
    """U-Net generator forward.  Input/output NCHW f32 (PyTorch convention)."""
    data = jnp.transpose(x_nchw, (0, 2, 3, 1)).astype(jnp.bfloat16)   # -> NHWC
    leap = []
    for li, p in enumerate(params["enc"]):
        in_act = 0.2 if li > 0 else None          # fused nn.LeakyReLU(0.2)
        data = conv4x4_s2(data, p["wm"], p["scale"], p["bias"], in_act=in_act)
        leap.append(data)

    n_dec = len(params["dec"])
    xs = [data]                                   # decoder 0 input = bottleneck
    for li, p in enumerate(params["dec"]):
        last = li == n_dec - 1
        data = convT4x4_s2(xs, p["wms"], p["scale"], p["bias"],
                           in_act=0.0,            # fused nn.ReLU
                           out_act="tanh" if last else "none",
                           out_dtype=jnp.float32 if last else jnp.bfloat16)
        if not last:
            xs = [leap[-(li + 2)], data]          # torch.cat(dim=1), unmaterialized
    return jnp.transpose(data, (0, 3, 1, 2)).astype(jnp.float32)      # -> NCHW


# ---------------------------------------------------------------------------
# Reference ops (for small self-checks of the Pallas lowering only)
# ---------------------------------------------------------------------------
def _conv_ref(x, w):
    return jax.lax.conv_general_dilated(
        x, jnp.transpose(w, (2, 3, 1, 0)), (2, 2), ((1, 1), (1, 1)),
        dimension_numbers=("NHWC", "HWIO", "NHWC"),
        precision=jax.lax.Precision.HIGHEST)


def _convT_ref(x, w):
    wf = jnp.transpose(w[:, :, ::-1, ::-1], (2, 3, 0, 1))
    return jax.lax.conv_general_dilated(
        x, wf, (1, 1), ((2, 2), (2, 2)), lhs_dilation=(2, 2),
        dimension_numbers=("NHWC", "HWIO", "NHWC"),
        precision=jax.lax.Precision.HIGHEST)


if __name__ == "__main__":
    key = jax.random.PRNGKey(0)
    pkey, xkey, ckey = jax.random.split(key, 3)

    # --- small sanity checks of the Pallas conv / conv-transpose lowerings ---
    k1, k2, k3, k4 = jax.random.split(ckey, 4)
    xa = jax.random.normal(k1, (1, 8, 8, 6), jnp.float32)
    wa = jax.random.normal(k2, (7, 6, 4, 4), jnp.float32) * 0.1
    ones7 = jnp.ones((7,), jnp.float32)
    zeros7 = jnp.zeros((7,), jnp.float32)

    ya = conv4x4_s2(xa, pack_conv_weight(wa), ones7, zeros7,
                    in_act=None, out_dtype=jnp.float32)
    assert jnp.allclose(ya, _conv_ref(xa, wa), atol=3e-2, rtol=3e-2)

    # fused LeakyReLU(0.2) prologue
    ya2 = conv4x4_s2(xa, pack_conv_weight(wa), ones7, zeros7,
                     in_act=0.2, out_dtype=jnp.float32)
    ra2 = _conv_ref(jnp.where(xa >= 0.0, xa, 0.2 * xa), wa)
    assert jnp.allclose(ya2, ra2, atol=3e-2, rtol=3e-2)

    xb = jax.random.normal(k3, (1, 4, 4, 6), jnp.float32)
    wb = jax.random.normal(k4, (6, 5, 4, 4), jnp.float32) * 0.1
    yb = convT4x4_s2([xb], pack_convT_weight(wb),
                     jnp.ones((5,), jnp.float32), jnp.zeros((5,), jnp.float32),
                     in_act=None, out_act="none", out_dtype=jnp.float32)
    assert jnp.allclose(yb, _convT_ref(xb, wb), atol=3e-2, rtol=3e-2)

    # --- full generator forward ---
    # The 8-level encoder halves the spatial dims 8 times, so 256x256 is the
    # smallest spatial size the architecture supports (1x1 bottleneck).
    x = jax.random.normal(xkey, (1, 3, 256, 256), jnp.float32)
    params = init_params(pkey)

    fwd = jax.jit(generator_forward)
    out = jax.block_until_ready(fwd(params, x))
    assert out.shape == (1, 3, 256, 256)
    assert bool(jnp.all(jnp.isfinite(out)))
    print("KERNEL_OK")
</pallas_src>

<mosaic_0001>
module attributes {stable_mosaic.version = 11 : i64} {
  func.func @_matmul_kernel(%arg0: i32, %arg1: i32, %arg2: i32, %arg3: memref<16x128xbf16, #tpu.memory_space<vmem>>, %arg4: memref<128x7xbf16, #tpu.memory_space<vmem>>, %arg5: memref<1x7xf32, #tpu.memory_space<vmem>>, %arg6: memref<1x7xf32, #tpu.memory_space<vmem>>, %arg7: memref<16x7xf32, #tpu.memory_space<vmem>>, %arg8: memref<16x7xf32, #tpu.memory_space<vmem>>) attributes {dimension_semantics = [#tpu.dimension_semantics<parallel>, #tpu.dimension_semantics<parallel>, #tpu.dimension_semantics<arbitrary>], iteration_bounds = array<i64: 1, 1, 1>, scalar_prefetch = 0 : i64, scratch_operands = 1 : i64, tpu.core_type = #tpu.core_type<tc>, window_params = [{transform_indices = @transform_0, window_bounds = array<i64: 16, 128>}, {transform_indices = @transform_1, window_bounds = array<i64: 128, 7>}, {transform_indices = @transform_2, window_bounds = array<i64: 1, 7>}, {transform_indices = @transform_3, window_bounds = array<i64: 1, 7>}, {transform_indices = @transform_4, window_bounds = array<i64: 16, 7>}]} {
    %c0_i32 = arith.constant 0 : i32
    %0 = arith.cmpi eq, %arg2, %c0_i32 : i32
    %1 = arith.extui %0 : i1 to i32
    %c0_i32_0 = arith.constant 0 : i32
    %2 = arith.cmpi ne, %1, %c0_i32_0 : i32
    scf.if %2 {
      %cst_10 = arith.constant 0.000000e+00 : f32
      %12 = vector.broadcast %cst_10 : f32 to vector<16x7xf32>
      %c0_11 = arith.constant 0 : index
      %c0_12 = arith.constant 0 : index
      %13 = vector.load %arg8[%c0_11, %c0_12] : memref<16x7xf32, #tpu.memory_space<vmem>>, vector<16x7xf32>
      tpu.vector_store %arg8[%c0_11, %c0_12], %12 {strides = array<i32>} : memref<16x7xf32, #tpu.memory_space<vmem>>, vector<16x7xf32>,
    } else {
    }
    %c0 = arith.constant 0 : index
    %c0_1 = arith.constant 0 : index
    %3 = vector.load %arg3[%c0, %c0_1] : memref<16x128xbf16, #tpu.memory_space<vmem>>, vector<16x128xbf16>
    %c0_2 = arith.constant 0 : index
    %c0_3 = arith.constant 0 : index
    %4 = vector.load %arg8[%c0_2, %c0_3] : memref<16x7xf32, #tpu.memory_space<vmem>>, vector<16x7xf32>
    %c0_4 = arith.constant 0 : index
    %c0_5 = arith.constant 0 : index
    %5 = vector.load %arg4[%c0_4, %c0_5] : memref<128x7xbf16, #tpu.memory_space<vmem>>, vector<128x7xbf16>
    %cst = arith.constant dense<0.000000e+00> : vector<16x7xf32>
    %6 = tpu.matmul %3, %5, %cst {dimension_numbers = #tpu.dot_dimension_numbers<[1], [0], [0], [1], [0, 0, 1, 1], [], []>} : vector<16x128xbf16>, vector<128x7xbf16>, vector<16x7xf32> -> vector<16x7xf32>
    %7 = arith.addf %4, %6 : vector<16x7xf32>
    %c0_6 = arith.constant 0 : index
    %c0_7 = arith.constant 0 : index
    %8 = vector.load %arg8[%c0_6, %c0_7] : memref<16x7xf32, #tpu.memory_space<vmem>>, vector<16x7xf32>
    tpu.vector_store %arg8[%c0_6, %c0_7], %7 {strides = array<i32>} : memref<16x7xf32, #tpu.memory_space<vmem>>, vector<16x7xf32>,
    %c0_i32_8 = arith.constant 0 : i32
    %9 = arith.cmpi eq, %arg2, %c0_i32_8 : i32
    %10 = arith.extui %9 : i1 to i32
    %c0_i32_9 = arith.constant 0 : i32
    %11 = arith.cmpi ne, %10, %c0_i32_9 : i32
    scf.if %11 {
      %c0_10 = arith.constant 0 : index
      %c0_11 = arith.constant 0 : index
      %12 = vector.load %arg8[%c0_10, %c0_11] : memref<16x7xf32, #tpu.memory_space<vmem>>, vector<16x7xf32>
      %c0_12 = arith.constant 0 : index
      %c0_13 = arith.constant 0 : index
      %13 = vector.load %arg5[%c0_12, %c0_13] : memref<1x7xf32, #tpu.memory_space<vmem>>, vector<1x7xf32>
      %14 = vector.broadcast %13 : vector<1x7xf32> to vector<16x7xf32>
      %15 = arith.mulf %12, %14 : vector<16x7xf32>
      %c0_14 = arith.constant 0 : index
      %c0_15 = arith.constant 0 : index
      %16 = vector.load %arg6[%c0_14, %c0_15] : memref<1x7xf32, #tpu.memory_space<vmem>>, vector<1x7xf32>
      %17 = vector.broadcast %16 : vector<1x7xf32> to vector<16x7xf32>
      %18 = arith.addf %15, %17 : vector<16x7xf32>
      %c0_16 = arith.constant 0 : index
      %c0_17 = arith.constant 0 : index
      %19 = vector.load %arg7[%c0_16, %c0_17] : memref<16x7xf32, #tpu.memory_space<vmem>>, vector<16x7xf32>
      tpu.vector_store %arg7[%c0_16, %c0_17], %18 {strides = array<i32>} : memref<16x7xf32, #tpu.memory_space<vmem>>, vector<16x7xf32>,
    } else {
    }
    return
  }
  func.func @transform_0(%arg0: i32, %arg1: i32, %arg2: i32) -> (i32, i32) {
    %c0_i32 = arith.constant 0 : i32
    return %arg0, %arg2 : i32, i32
  }
  func.func @transform_1(%arg0: i32, %arg1: i32, %arg2: i32) -> (i32, i32) {
    %c0_i32 = arith.constant 0 : i32
    return %arg2, %arg1 : i32, i32
  }
  func.func @transform_2(%arg0: i32, %arg1: i32, %arg2: i32) -> (i32, i32) {
    %c0_i32 = arith.constant 0 : i32
    %c0_i32_0 = arith.constant 0 : i32
    return %c0_i32, %arg1 : i32, i32
  }
  func.func @transform_3(%arg0: i32, %arg1: i32, %arg2: i32) -> (i32, i32) {
    %c0_i32 = arith.constant 0 : i32
    %c0_i32_0 = arith.constant 0 : i32
    return %c0_i32, %arg1 : i32, i32
  }
  func.func @transform_4(%arg0: i32, %arg1: i32, %arg2: i32) -> (i32, i32) {
    %c0_i32 = arith.constant 0 : i32
    return %arg0, %arg1 : i32, i32
  }
}

</mosaic_0001>

<bundles_post_ra>
// kernel: tpu_custom_call.1
= control target key start
LH: loop header
LB: loop body
LE: loop exit
PB: predicated region body
PF: predicated region fallthrough
CT: control target
= control target key end

     0   :  { %vm22_vm0 = vcmask 56320   ;;  %v225_v0 = vmov 0.0   ;;  %vm226_vm1 = vmmov 0   ;;  %s297_s1 = inlined_call_operand.vmem [shape: bf16[128,7], index: 1, kind: input, shape index: {}]   ;;  %s298_s0 = inlined_call_operand.vmem [shape: bf16[16,128], index: 0, kind: input, shape index: {}]   ;;  %s299_s2 = inlined_call_operand.vmem [shape: f32[1,7], index: 2, kind: input, shape index: {}]   ;;  %s300_s3 = inlined_call_operand.vmem [shape: f32[1,7], index: 3, kind: input, shape index: {}]   ;;  %s301_s4 = inlined_call_operand.vmem [shape: f32[16,7], index: 4, kind: output, shape index: {}]  }
   0x1   :  { %194 = vmatprep.subr.bf16.mxu0 %v225_v0  ;;  %v216_v1 = vld [vmem:[%s297_s1] sm:$0xff]   ;;  %210 = vmatprep.mubr.msk.bf16.mxu0 %vm226_vm1, %v225_v0  ;;  %23 = vst.msk [vmem:[#allocation2] sm:$0xff] %vm22_vm0, %v225_v0  ;;  %24 = vst.msk [vmem:[#allocation2 + $0x8] sm:$0xff] %vm22_vm0, %v225_v0  ;;  %v217_v2 = vld [vmem:[%s297_s1 + $0x8] sm:$0xff]  }
   0x2   :  { %195 = vmatpush3.bf16.msra.mxu0 %v216_v1  ;;  %v218_v3 = vld [vmem:[%s297_s1 + $0x10] sm:$0xff]   ;;  %v219_v4 = vld [vmem:[%s297_s1 + $0x18] sm:$0xff]   ;;  %v220_v5 = vld [vmem:[%s297_s1 + $0x20] sm:$0xff]  }
   0x3   :  { %196 = vmatprep.subr.bf16.mxu0 %v225_v0  ;;  %v221_v6 = vld [vmem:[%s297_s1 + $0x28] sm:$0xff]   ;;  %v222_v7 = vld [vmem:[%s297_s1 + $0x30] sm:$0xff]   ;;  %v223_v8 = vld [vmem:[%s297_s1 + $0x38] sm:$0xff]  }
   0x4   :  { %v224_v9 = vld [vmem:[%s298_s0] sm:$0xff]  }
   0x5   :  { %v183_v18 = vld [vmem:[%s299_s2] ss:$0 sm:$0xff] }
   0x6   :  { %197 = vmatpush3.bf16.msra.mxu0 %v217_v2  ;;  %v184_v20 = vld [vmem:[%s300_s3] ss:$0 sm:$0xff] }
   0x7   :  { %198 = vmatprep.subr.bf16.mxu0 %v225_v0 }
   0x8   :  { %v27_v10 = vld [vmem:[#allocation2] sm:$0xff]  ;;  %v28_v12 = vld [vmem:[#allocation2 + $0x8] sm:$0xff] }
   0xa   :  { %199 = vmatpush3.bf16.msra.mxu0 %v218_v3 }
   0xb   :  { %200 = vmatprep.subr.bf16.mxu0 %v225_v0 }
   0xe   :  { %201 = vmatpush3.bf16.msra.mxu0 %v219_v4 }
   0xf   :  { %202 = vmatprep.subr.bf16.mxu0 %v225_v0 }
  0x12   :  { %203 = vmatpush3.bf16.msra.mxu0 %v220_v5 }
  0x13   :  { %204 = vmatprep.subr.bf16.mxu0 %v225_v0 }
  0x16   :  { %205 = vmatpush3.bf16.msra.mxu0 %v221_v6 }
  0x17   :  { %206 = vmatprep.subr.bf16.mxu0 %v225_v0 }
  0x1a   :  { %207 = vmatpush3.bf16.msra.mxu0 %v222_v7 }
  0x1b   :  { %208 = vmatprep.subr.bf16.mxu0 %v225_v0 }
  0x1e   :  { %209 = vmatpush3.bf16.msra.mxu0 %v223_v8 }
  0x21   :  { %211 = vmatmul.mubr.bf16.vlgmr.msra.gmra.mrb[0].mxu0 %v224_v9 }
  0xf4   :  { %v133_v11 = vpop.f32.mrb[0].mxu0 }
  0xf5   :  { %v140_v13 = vadd.f32 %v133_v11, %v27_v10  ;;  %v212_v14 = vpop.f32.mrb[1].mxu0 }
  0xf6   :  { %v136_v15 = vpop.f32.mrb[2].mxu0 }
  0xf7   :  { %143 = vst.msk [vmem:[#allocation2] sm:$0xff] %vm22_vm0, %v140_v13  ;;  %v141_v16 = vadd.f32 %v136_v15, %v28_v12  ;;  %v213_v17 = vpop.f32.mrb[3].mxu0 }
  0xf9   :  { %144 = vst.msk [vmem:[#allocation2 + $0x8] sm:$0xff] %vm22_vm0, %v141_v16 }
  0xfe   :  { %v148_v19 = vld [vmem:[#allocation2] sm:$0xff] }
  0xff   :  { %v157_v21 = vmul.f32 %v183_v18, %v148_v19 }
 0x100   :  { %v149_v22 = vld [vmem:[#allocation2 + $0x8] sm:$0xff] }
 0x101   :  { %v166_v23 = vadd.f32 %v184_v20, %v157_v21  ;;  %v158_v24 = vmul.f32 %v183_v18, %v149_v22 }
 0x103   :  { %168 = vst.msk [vmem:[%s301_s4] sm:$0xff] %vm22_vm0, %v166_v23  ;;  %v167_v25 = vadd.f32 %v184_v20, %v158_v24 }
 0x105   :  { %169 = vst.msk [vmem:[%s301_s4 + $0x8] sm:$0xff] %vm22_vm0, %v167_v25 }

</bundles_post_ra>
